<compile_context>
chip_gen: v5e
topology: v5e:2x2
jax: 0.10.0
libtpu: 0.0.40
codegen_flags: <defaults>
</compile_context>

<pallas_src>
import jax
import jax.numpy as jnp
from jax.experimental import pallas as pl
from jax.experimental.pallas import tpu as pltpu


# --------------------------------------------------------------------------
# kernel
# --------------------------------------------------------------------------
def ae_kernel(x_ref, w1_ref, b1_ref, w2_ref, b2_ref,
              w3_ref, b3_ref, w4_ref, b4_ref, o_ref):
    cd = w1_ref.dtype                      # MXU input dtype (bfloat16)
    x = x_ref[...].astype(cd)              # f32 -> bf16 cast hidden under the DMA
    # encoder -------------------------------------------------------------
    h = jnp.dot(x, w1_ref[...], preferred_element_type=jnp.float32) + b1_ref[...]
    h = jnp.maximum(h, 0.0).astype(cd)     # ReLU in f32, cast for next MXU pass
    h = jnp.dot(h, w2_ref[...], preferred_element_type=jnp.float32) + b2_ref[...]
    h = jnp.maximum(h, 0.0).astype(cd)
    # decoder -------------------------------------------------------------
    h = jnp.dot(h, w3_ref[...], preferred_element_type=jnp.float32) + b3_ref[...]
    h = jnp.maximum(h, 0.0).astype(cd)
    out = jnp.dot(h, w4_ref[...], preferred_element_type=jnp.float32) + b4_ref[...]
    o_ref[...] = out.astype(o_ref.dtype)


# --------------------------------------------------------------------------
# hardware introspection (robust: everything has a safe fallback)
# --------------------------------------------------------------------------
def _round_up(v, m):
    return -(-v // m) * m


def _vmem_capacity_bytes():
    try:
        info = pltpu.get_tpu_info()
        cap = getattr(info, "vmem_capacity_bytes", None)
        if cap:
            return int(cap)
    except Exception:
        pass
    return 64 * 1024 * 1024          # conservative: v7x per-TC VMEM


def _num_tensorcores():
    # >= 2 only on megacore-style chips (v7x): gates the small-batch split.
    try:
        info = pltpu.get_tpu_info()
        for attr in ("num_cores", "num_tensorcores", "tensorcore_count", "core_count"):
            v = getattr(info, attr, None)
            if isinstance(v, int) and v > 0:
                return v
    except Exception:
        pass
    try:
        v = getattr(jax.devices()[0], "num_cores", None)
        if isinstance(v, int) and v > 0:
            return v
    except Exception:
        pass
    return 1


# --------------------------------------------------------------------------
# tile selection (VMEM- / D- / generation-aware)
# --------------------------------------------------------------------------
def _pick_batch_tile(B, D, H1, H2, num_cores, vmem_cap):
    budget = int(vmem_cap * 0.70)
    # resident bf16 weights (single-buffered)
    w_bytes = 2 * (D * H1 + 2 * H1 * H2 + H1 * D)
    # per batch row: x f32 double-buffer (8*D) + out f32 double-buffer (8*D)
    # + final f32 activation (4*D) + f32+bf16 hidden intermediates (6*(H1+H2))
    per_row = 16 * D + 4 * D + 6 * (H1 + H2)
    avail = budget - w_bytes - (2 << 20)
    if avail <= 0:
        # TODO(synk): resident weights exceed VMEM; needs a K/N-tiled fallback.
        max_tile = 8
    else:
        max_tile = max(8, (int(avail // per_row) // 8) * 8)
    tile = min(1024, max_tile)

    b_rounded = _round_up(B, 8)
    if b_rounded <= tile:
        if num_cores >= 2 and b_rounded >= 16:
            # split small batches into ~2 steps so both TCs get work (v7x only)
            tile = max(8, _round_up(-(-B // 2), 8))
        else:
            tile = b_rounded                 # single grid step on single-TC chips
    elif num_cores >= 2:
        steps = -(-B // tile)
        if steps % 2:                        # prefer an even step count on v7x
            tile2 = max(8, _round_up(-(-B // (steps + 1)), 8))
            if (-(-B // tile2)) % 2 == 0:
                tile = tile2
    return tile


# --------------------------------------------------------------------------
# parameter preparation (done ONCE, outside the per-call path)
# --------------------------------------------------------------------------
def prepare_params(params, lane=128):
    """Zero-pad hidden dims up to a multiple of 128 (lane-dense intermediates,
    full MXU tiles) and cast weights to bf16 once.  Biases stay f32 (added to
    the f32 accumulator).  Padding is numerically inert (zero rows/cols, zero
    bias, ReLU(0)=0)."""
    (w1, b1), (w2, b2), (w3, b3), (w4, b4) = params
    D = w1.shape[0]
    h1, h2 = w1.shape[1], w2.shape[1]
    H1 = _round_up(max(h1, 1), lane)
    H2 = _round_up(max(h2, 1), lane)
    cd = jnp.bfloat16

    def pad_w(w, rows, cols):
        r, c = w.shape
        return jnp.pad(w, ((0, rows - r), (0, cols - c))).astype(cd)

    def pad_b(b, cols):
        b = jnp.reshape(b, (1, -1)).astype(jnp.float32)
        return jnp.pad(b, ((0, 0), (0, cols - b.shape[1])))

    flat = (pad_w(w1, D, H1), pad_b(b1, H1),
            pad_w(w2, H1, H2), pad_b(b2, H2),
            pad_w(w3, H2, H1), pad_b(b3, H1),
            pad_w(w4, H1, D), pad_b(b4, D))
    return flat, (D, H1, H2)


# --------------------------------------------------------------------------
# forward wrapper
# --------------------------------------------------------------------------
def ae_forward(x, prepared, dims, *, batch_tile=None):
    """Fused AE forward.  x: (B, D) float32.  Returns (B, D) float32."""
    w1, b1, w2, b2, w3, b3, w4, b4 = prepared
    D, H1, H2 = dims
    B, Dx = x.shape
    assert Dx == D, "input feature dim mismatch"

    vmem_cap = _vmem_capacity_bytes()
    n_cores = _num_tensorcores()
    tile = _pick_batch_tile(B, D, H1, H2, n_cores, vmem_cap) \
        if batch_tile is None else max(8, (batch_tile // 8) * 8)

    # Pad ragged batches only when actually needed (no-op for aligned B).
    Bp = pl.cdiv(B, tile) * tile
    x_in = x if Bp == B else jnp.pad(x, ((0, Bp - B), (0, 0)))

    vmem_limit = min(int(vmem_cap * 0.85), 128 * 1024 * 1024)

    def x_map(i):
        return (i, 0)

    def rep_map(i):  # weights / biases: same resident block every grid step
        return (0, 0)

    def run(single_buffer_weights):
        if single_buffer_weights:
            def resident(a):
                return pl.BlockSpec(a.shape, rep_map,
                                    pipeline_mode=pl.Buffered(1))
        else:
            def resident(a):
                return pl.BlockSpec(a.shape, rep_map)

        return pl.pallas_call(
            ae_kernel,
            out_shape=jax.ShapeDtypeStruct((Bp, D), jnp.float32),
            grid_spec=pltpu.PrefetchScalarGridSpec(
                num_scalar_prefetch=0,
                grid=(Bp // tile,),
                in_specs=[
                    pl.BlockSpec((tile, D), x_map),
                    resident(w1), resident(b1),
                    resident(w2), resident(b2),
                    resident(w3), resident(b3),
                    resident(w4), resident(b4),
                ],
                out_specs=pl.BlockSpec((tile, D), x_map),
            ),
            compiler_params=pltpu.CompilerParams(
                dimension_semantics=("parallel",),
                vmem_limit_bytes=vmem_limit),
        )(x_in, w1, b1, w2, b2, w3, b3, w4, b4)

    try:
        out = run(single_buffer_weights=True)
    except Exception:
        # pipeline_mode=pl.Buffered(1) unsupported on this jax version — the
        # fallback is functionally identical (just double-buffers the weights).
        out = run(single_buffer_weights=False)

    return out if Bp == B else out[:B]


# --------------------------------------------------------------------------
# init + references
# --------------------------------------------------------------------------
def init_params(key, input_dim):
    """Deterministic init of the 4 Linear layers (shapes from AE.__init__)."""
    d_half = input_dim // 2
    d_quarter = input_dim // 4
    dims = [(input_dim, d_half),   # encoder Linear 1
            (d_half, d_quarter),   # encoder Linear 2
            (d_quarter, d_half),   # decoder Linear 1
            (d_half, input_dim)]   # decoder Linear 2
    params = []
    for (din, dout) in dims:
        key, kw, kb = jax.random.split(key, 3)
        bound = 1.0 / (din ** 0.5)  # PyTorch Linear default init range
        w = jax.random.uniform(kw, (din, dout), jnp.float32, -bound, bound)
        b = jax.random.uniform(kb, (dout,), jnp.float32, -bound, bound)
        params.append((w, b))
    return params


def ae_reference_bf16(x, params):
    """Pure-JAX reference with the kernel's numerics (bf16 matmul inputs,
    fp32 accumulation, f32 bias/ReLU)."""
    cd = jnp.bfloat16
    h = x.astype(cd)
    n = len(params)
    for i, (w, b) in enumerate(params):
        h = jnp.dot(h, w.astype(cd),
                    preferred_element_type=jnp.float32) + b.reshape(1, -1)
        if i < n - 1:
            h = jnp.maximum(h, 0.0).astype(cd)
    return h


def ae_reference_fp32(x, params):
    """Full-precision reference (matches the PyTorch forward exactly)."""
    (w1, b1), (w2, b2), (w3, b3), (w4, b4) = params
    h = jnp.maximum(x @ w1 + b1.reshape(1, -1), 0.0)
    h = jnp.maximum(h @ w2 + b2.reshape(1, -1), 0.0)
    h = jnp.maximum(h @ w3 + b3.reshape(1, -1), 0.0)
    return h @ w4 + b4.reshape(1, -1)


# TODO(synk): the PyTorch class also contains the Adam/MSE training loop
# (train_autoencoder_content); only the forward pass is implemented here.

if __name__ == "__main__":
    key = jax.random.PRNGKey(0)
    batch, input_dim = 64, 128   # X_train.shape[1] == 128 -> hidden 64, bottleneck 32

    kx, kp = jax.random.split(key)
    x = jax.random.normal(kx, (batch, input_dim), jnp.float32)
    params = init_params(kp, input_dim)

    prepared, dims = prepare_params(params)   # one-time bf16 cast + lane padding

    out = ae_forward(x, prepared, dims)
    out = jax.block_until_ready(out)
    assert out.shape == (batch, input_dim)

    # Tight check vs. a bf16-matched reference, loose check vs. the pure-fp32
    # (PyTorch-equivalent) reference.
    ref_bf16 = ae_reference_bf16(x, params)
    assert jnp.allclose(out, ref_bf16, atol=5e-2, rtol=5e-2), "mismatch vs bf16 reference"
    ref_f32 = ae_reference_fp32(x, params)
    assert jnp.allclose(out, ref_f32, atol=1e-1, rtol=1e-1), "mismatch vs fp32 reference"

    print("KERNEL_OK")
</pallas_src>

<mosaic_0001>
module attributes {stable_mosaic.version = 11 : i64} {
  func.func @ae_kernel(%arg0: i32, %arg1: memref<64x128xf32, #tpu.memory_space<vmem>>, %arg2: memref<128x128xbf16, #tpu.memory_space<vmem>>, %arg3: memref<1x128xf32, #tpu.memory_space<vmem>>, %arg4: memref<128x128xbf16, #tpu.memory_space<vmem>>, %arg5: memref<1x128xf32, #tpu.memory_space<vmem>>, %arg6: memref<128x128xbf16, #tpu.memory_space<vmem>>, %arg7: memref<1x128xf32, #tpu.memory_space<vmem>>, %arg8: memref<128x128xbf16, #tpu.memory_space<vmem>>, %arg9: memref<1x128xf32, #tpu.memory_space<vmem>>, %arg10: memref<64x128xf32, #tpu.memory_space<vmem>>) attributes {dimension_semantics = [#tpu.dimension_semantics<parallel>], iteration_bounds = array<i64: 1>, scalar_prefetch = 0 : i64, scratch_operands = 0 : i64, tpu.core_type = #tpu.core_type<tc>, window_params = [{transform_indices = @transform_0, window_bounds = array<i64: 64, 128>}, {pipeline_mode = #tpu.pipeline_mode<synchronous>, transform_indices = @transform_1, window_bounds = array<i64: 128, 128>}, {pipeline_mode = #tpu.pipeline_mode<synchronous>, transform_indices = @transform_2, window_bounds = array<i64: 1, 128>}, {pipeline_mode = #tpu.pipeline_mode<synchronous>, transform_indices = @transform_3, window_bounds = array<i64: 128, 128>}, {pipeline_mode = #tpu.pipeline_mode<synchronous>, transform_indices = @transform_4, window_bounds = array<i64: 1, 128>}, {pipeline_mode = #tpu.pipeline_mode<synchronous>, transform_indices = @transform_5, window_bounds = array<i64: 128, 128>}, {pipeline_mode = #tpu.pipeline_mode<synchronous>, transform_indices = @transform_6, window_bounds = array<i64: 1, 128>}, {pipeline_mode = #tpu.pipeline_mode<synchronous>, transform_indices = @transform_7, window_bounds = array<i64: 128, 128>}, {pipeline_mode = #tpu.pipeline_mode<synchronous>, transform_indices = @transform_8, window_bounds = array<i64: 1, 128>}, {transform_indices = @transform_9, window_bounds = array<i64: 64, 128>}]} {
    %c0 = arith.constant 0 : index
    %c0_0 = arith.constant 0 : index
    %0 = vector.load %arg1[%c0, %c0_0] : memref<64x128xf32, #tpu.memory_space<vmem>>, vector<64x128xf32>
    %1 = arith.truncf %0 : vector<64x128xf32> to vector<64x128xbf16>
    %c0_1 = arith.constant 0 : index
    %c0_2 = arith.constant 0 : index
    %2 = vector.load %arg2[%c0_1, %c0_2] : memref<128x128xbf16, #tpu.memory_space<vmem>>, vector<128x128xbf16>
    %cst = arith.constant dense<0.000000e+00> : vector<64x128xf32>
    %3 = tpu.matmul %1, %2, %cst {dimension_numbers = #tpu.dot_dimension_numbers<[1], [0], [0], [1], [0, 0, 1, 1], [], []>} : vector<64x128xbf16>, vector<128x128xbf16>, vector<64x128xf32> -> vector<64x128xf32>
    %c0_3 = arith.constant 0 : index
    %c0_4 = arith.constant 0 : index
    %4 = vector.load %arg3[%c0_3, %c0_4] : memref<1x128xf32, #tpu.memory_space<vmem>>, vector<1x128xf32>
    %5 = vector.broadcast %4 : vector<1x128xf32> to vector<64x128xf32>
    %6 = arith.addf %3, %5 : vector<64x128xf32>
    %cst_5 = arith.constant 0.000000e+00 : f32
    %7 = vector.broadcast %cst_5 : f32 to vector<64x128xf32>
    %8 = arith.maximumf %6, %7 : vector<64x128xf32>
    %9 = arith.truncf %8 : vector<64x128xf32> to vector<64x128xbf16>
    %c0_6 = arith.constant 0 : index
    %c0_7 = arith.constant 0 : index
    %10 = vector.load %arg4[%c0_6, %c0_7] : memref<128x128xbf16, #tpu.memory_space<vmem>>, vector<128x128xbf16>
    %cst_8 = arith.constant dense<0.000000e+00> : vector<64x128xf32>
    %11 = tpu.matmul %9, %10, %cst_8 {dimension_numbers = #tpu.dot_dimension_numbers<[1], [0], [0], [1], [0, 0, 1, 1], [], []>} : vector<64x128xbf16>, vector<128x128xbf16>, vector<64x128xf32> -> vector<64x128xf32>
    %c0_9 = arith.constant 0 : index
    %c0_10 = arith.constant 0 : index
    %12 = vector.load %arg5[%c0_9, %c0_10] : memref<1x128xf32, #tpu.memory_space<vmem>>, vector<1x128xf32>
    %13 = vector.broadcast %12 : vector<1x128xf32> to vector<64x128xf32>
    %14 = arith.addf %11, %13 : vector<64x128xf32>
    %cst_11 = arith.constant 0.000000e+00 : f32
    %15 = vector.broadcast %cst_11 : f32 to vector<64x128xf32>
    %16 = arith.maximumf %14, %15 : vector<64x128xf32>
    %17 = arith.truncf %16 : vector<64x128xf32> to vector<64x128xbf16>
    %c0_12 = arith.constant 0 : index
    %c0_13 = arith.constant 0 : index
    %18 = vector.load %arg6[%c0_12, %c0_13] : memref<128x128xbf16, #tpu.memory_space<vmem>>, vector<128x128xbf16>
    %cst_14 = arith.constant dense<0.000000e+00> : vector<64x128xf32>
    %19 = tpu.matmul %17, %18, %cst_14 {dimension_numbers = #tpu.dot_dimension_numbers<[1], [0], [0], [1], [0, 0, 1, 1], [], []>} : vector<64x128xbf16>, vector<128x128xbf16>, vector<64x128xf32> -> vector<64x128xf32>
    %c0_15 = arith.constant 0 : index
    %c0_16 = arith.constant 0 : index
    %20 = vector.load %arg7[%c0_15, %c0_16] : memref<1x128xf32, #tpu.memory_space<vmem>>, vector<1x128xf32>
    %21 = vector.broadcast %20 : vector<1x128xf32> to vector<64x128xf32>
    %22 = arith.addf %19, %21 : vector<64x128xf32>
    %cst_17 = arith.constant 0.000000e+00 : f32
    %23 = vector.broadcast %cst_17 : f32 to vector<64x128xf32>
    %24 = arith.maximumf %22, %23 : vector<64x128xf32>
    %25 = arith.truncf %24 : vector<64x128xf32> to vector<64x128xbf16>
    %c0_18 = arith.constant 0 : index
    %c0_19 = arith.constant 0 : index
    %26 = vector.load %arg8[%c0_18, %c0_19] : memref<128x128xbf16, #tpu.memory_space<vmem>>, vector<128x128xbf16>
    %cst_20 = arith.constant dense<0.000000e+00> : vector<64x128xf32>
    %27 = tpu.matmul %25, %26, %cst_20 {dimension_numbers = #tpu.dot_dimension_numbers<[1], [0], [0], [1], [0, 0, 1, 1], [], []>} : vector<64x128xbf16>, vector<128x128xbf16>, vector<64x128xf32> -> vector<64x128xf32>
    %c0_21 = arith.constant 0 : index
    %c0_22 = arith.constant 0 : index
    %28 = vector.load %arg9[%c0_21, %c0_22] : memref<1x128xf32, #tpu.memory_space<vmem>>, vector<1x128xf32>
    %29 = vector.broadcast %28 : vector<1x128xf32> to vector<64x128xf32>
    %30 = arith.addf %27, %29 : vector<64x128xf32>
    %c0_23 = arith.constant 0 : index
    %c0_24 = arith.constant 0 : index
    %31 = vector.load %arg10[%c0_23, %c0_24] : memref<64x128xf32, #tpu.memory_space<vmem>>, vector<64x128xf32>
    tpu.vector_store %arg10[%c0_23, %c0_24], %30 {strides = array<i32>} : memref<64x128xf32, #tpu.memory_space<vmem>>, vector<64x128xf32>,
    return
  }
  func.func @transform_0(%arg0: i32) -> (i32, i32) {
    %c0_i32 = arith.constant 0 : i32
    %c0_i32_0 = arith.constant 0 : i32
    return %arg0, %c0_i32 : i32, i32
  }
  func.func @transform_1(%arg0: i32) -> (i32, i32) {
    %c0_i32 = arith.constant 0 : i32
    %c0_i32_0 = arith.constant 0 : i32
    %c0_i32_1 = arith.constant 0 : i32
    return %c0_i32, %c0_i32_0 : i32, i32
  }
  func.func @transform_2(%arg0: i32) -> (i32, i32) {
    %c0_i32 = arith.constant 0 : i32
    %c0_i32_0 = arith.constant 0 : i32
    %c0_i32_1 = arith.constant 0 : i32
    return %c0_i32, %c0_i32_0 : i32, i32
  }
  func.func @transform_3(%arg0: i32) -> (i32, i32) {
    %c0_i32 = arith.constant 0 : i32
    %c0_i32_0 = arith.constant 0 : i32
    %c0_i32_1 = arith.constant 0 : i32
    return %c0_i32, %c0_i32_0 : i32, i32
  }
  func.func @transform_4(%arg0: i32) -> (i32, i32) {
    %c0_i32 = arith.constant 0 : i32
    %c0_i32_0 = arith.constant 0 : i32
    %c0_i32_1 = arith.constant 0 : i32
    return %c0_i32, %c0_i32_0 : i32, i32
  }
  func.func @transform_5(%arg0: i32) -> (i32, i32) {
    %c0_i32 = arith.constant 0 : i32
    %c0_i32_0 = arith.constant 0 : i32
    %c0_i32_1 = arith.constant 0 : i32
    return %c0_i32, %c0_i32_0 : i32, i32
  }
  func.func @transform_6(%arg0: i32) -> (i32, i32) {
    %c0_i32 = arith.constant 0 : i32
    %c0_i32_0 = arith.constant 0 : i32
    %c0_i32_1 = arith.constant 0 : i32
    return %c0_i32, %c0_i32_0 : i32, i32
  }
  func.func @transform_7(%arg0: i32) -> (i32, i32) {
    %c0_i32 = arith.constant 0 : i32
    %c0_i32_0 = arith.constant 0 : i32
    %c0_i32_1 = arith.constant 0 : i32
    return %c0_i32, %c0_i32_0 : i32, i32
  }
  func.func @transform_8(%arg0: i32) -> (i32, i32) {
    %c0_i32 = arith.constant 0 : i32
    %c0_i32_0 = arith.constant 0 : i32
    %c0_i32_1 = arith.constant 0 : i32
    return %c0_i32, %c0_i32_0 : i32, i32
  }
  func.func @transform_9(%arg0: i32) -> (i32, i32) {
    %c0_i32 = arith.constant 0 : i32
    %c0_i32_0 = arith.constant 0 : i32
    return %arg0, %c0_i32 : i32, i32
  }
}

module attributes {stable_mosaic.version = 11 : i64} {
  func.func @ae_kernel(%arg0: i32, %arg1: memref<64x128xf32, #tpu.memory_space<vmem>>, %arg2: memref<128x128xbf16, #tpu.memory_space<vmem>>, %arg3: memref<1x128xf32, #tpu.memory_space<vmem>>, %arg4: memref<128x128xbf16, #tpu.memory_space<vmem>>, %arg5: memref<1x128xf32, #tpu.memory_space<vmem>>, %arg6: memref<128x128xbf16, #tpu.memory_space<vmem>>, %arg7: memref<1x128xf32, #tpu.memory_space<vmem>>, %arg8: memref<128x128xbf16, #tpu.memory_space<vmem>>, %arg9: memref<1x128xf32, #tpu.memory_space<vmem>>, %arg10: memref<64x128xf32, #tpu.memory_space<vmem>>) attributes {dimension_semantics = [#tpu.dimension_semantics<parallel>], iteration_bounds = array<i64: 1>, scalar_prefetch = 0 : i64, scratch_operands = 0 : i64, tpu.core_type = #tpu.core_type<tc>, window_params = [{transform_indices = @transform_0, window_bounds = array<i64: 64, 128>}, {pipeline_mode = #tpu.pipeline_mode<synchronous>, transform_indices = @transform_1, window_bounds = array<i64: 128, 128>}, {pipeline_mode = #tpu.pipeline_mode<synchronous>, transform_indices = @transform_2, window_bounds = array<i64: 1, 128>}, {pipeline_mode = #tpu.pipeline_mode<synchronous>, transform_indices = @transform_3, window_bounds = array<i64: 128, 128>}, {pipeline_mode = #tpu.pipeline_mode<synchronous>, transform_indices = @transform_4, window_bounds = array<i64: 1, 128>}, {pipeline_mode = #tpu.pipeline_mode<synchronous>, transform_indices = @transform_5, window_bounds = array<i64: 128, 128>}, {pipeline_mode = #tpu.pipeline_mode<synchronous>, transform_indices = @transform_6, window_bounds = array<i64: 1, 128>}, {pipeline_mode = #tpu.pipeline_mode<synchronous>, transform_indices = @transform_7, window_bounds = array<i64: 128, 128>}, {pipeline_mode = #tpu.pipeline_mode<synchronous>, transform_indices = @transform_8, window_bounds = array<i64: 1, 128>}, {transform_indices = @transform_9, window_bounds = array<i64: 64, 128>}]} {
    %c0 = arith.constant 0 : index
    %c0_0 = arith.constant 0 : index
    %0 = vector.load %arg1[%c0, %c0_0] : memref<64x128xf32, #tpu.memory_space<vmem>>, vector<64x128xf32>
    %1 = arith.truncf %0 : vector<64x128xf32> to vector<64x128xbf16>
    %c0_1 = arith.constant 0 : index
    %c0_2 = arith.constant 0 : index
    %2 = vector.load %arg2[%c0_1, %c0_2] : memref<128x128xbf16, #tpu.memory_space<vmem>>, vector<128x128xbf16>
    %cst = arith.constant dense<0.000000e+00> : vector<64x128xf32>
    %3 = tpu.matmul %1, %2, %cst {dimension_numbers = #tpu.dot_dimension_numbers<[1], [0], [0], [1], [0, 0, 1, 1], [], []>} : vector<64x128xbf16>, vector<128x128xbf16>, vector<64x128xf32> -> vector<64x128xf32>
    %c0_3 = arith.constant 0 : index
    %c0_4 = arith.constant 0 : index
    %4 = vector.load %arg3[%c0_3, %c0_4] : memref<1x128xf32, #tpu.memory_space<vmem>>, vector<1x128xf32>
    %5 = vector.broadcast %4 : vector<1x128xf32> to vector<64x128xf32>
    %6 = arith.addf %3, %5 : vector<64x128xf32>
    %cst_5 = arith.constant 0.000000e+00 : f32
    %7 = vector.broadcast %cst_5 : f32 to vector<64x128xf32>
    %8 = arith.maximumf %6, %7 : vector<64x128xf32>
    %9 = arith.truncf %8 : vector<64x128xf32> to vector<64x128xbf16>
    %c0_6 = arith.constant 0 : index
    %c0_7 = arith.constant 0 : index
    %10 = vector.load %arg4[%c0_6, %c0_7] : memref<128x128xbf16, #tpu.memory_space<vmem>>, vector<128x128xbf16>
    %cst_8 = arith.constant dense<0.000000e+00> : vector<64x128xf32>
    %11 = tpu.matmul %9, %10, %cst_8 {dimension_numbers = #tpu.dot_dimension_numbers<[1], [0], [0], [1], [0, 0, 1, 1], [], []>} : vector<64x128xbf16>, vector<128x128xbf16>, vector<64x128xf32> -> vector<64x128xf32>
    %c0_9 = arith.constant 0 : index
    %c0_10 = arith.constant 0 : index
    %12 = vector.load %arg5[%c0_9, %c0_10] : memref<1x128xf32, #tpu.memory_space<vmem>>, vector<1x128xf32>
    %13 = vector.broadcast %12 : vector<1x128xf32> to vector<64x128xf32>
    %14 = arith.addf %11, %13 : vector<64x128xf32>
    %cst_11 = arith.constant 0.000000e+00 : f32
    %15 = vector.broadcast %cst_11 : f32 to vector<64x128xf32>
    %16 = arith.maximumf %14, %15 : vector<64x128xf32>
    %17 = arith.truncf %16 : vector<64x128xf32> to vector<64x128xbf16>
    %c0_12 = arith.constant 0 : index
    %c0_13 = arith.constant 0 : index
    %18 = vector.load %arg6[%c0_12, %c0_13] : memref<128x128xbf16, #tpu.memory_space<vmem>>, vector<128x128xbf16>
    %cst_14 = arith.constant dense<0.000000e+00> : vector<64x128xf32>
    %19 = tpu.matmul %17, %18, %cst_14 {dimension_numbers = #tpu.dot_dimension_numbers<[1], [0], [0], [1], [0, 0, 1, 1], [], []>} : vector<64x128xbf16>, vector<128x128xbf16>, vector<64x128xf32> -> vector<64x128xf32>
    %c0_15 = arith.constant 0 : index
    %c0_16 = arith.constant 0 : index
    %20 = vector.load %arg7[%c0_15, %c0_16] : memref<1x128xf32, #tpu.memory_space<vmem>>, vector<1x128xf32>
    %21 = vector.broadcast %20 : vector<1x128xf32> to vector<64x128xf32>
    %22 = arith.addf %19, %21 : vector<64x128xf32>
    %cst_17 = arith.constant 0.000000e+00 : f32
    %23 = vector.broadcast %cst_17 : f32 to vector<64x128xf32>
    %24 = arith.maximumf %22, %23 : vector<64x128xf32>
    %25 = arith.truncf %24 : vector<64x128xf32> to vector<64x128xbf16>
    %c0_18 = arith.constant 0 : index
    %c0_19 = arith.constant 0 : index
    %26 = vector.load %arg8[%c0_18, %c0_19] : memref<128x128xbf16, #tpu.memory_space<vmem>>, vector<128x128xbf16>
    %cst_20 = arith.constant dense<0.000000e+00> : vector<64x128xf32>
    %27 = tpu.matmul %25, %26, %cst_20 {dimension_numbers = #tpu.dot_dimension_numbers<[1], [0], [0], [1], [0, 0, 1, 1], [], []>} : vector<64x128xbf16>, vector<128x128xbf16>, vector<64x128xf32> -> vector<64x128xf32>
    %c0_21 = arith.constant 0 : index
    %c0_22 = arith.constant 0 : index
    %28 = vector.load %arg9[%c0_21, %c0_22] : memref<1x128xf32, #tpu.memory_space<vmem>>, vector<1x128xf32>
    %29 = vector.broadcast %28 : vector<1x128xf32> to vector<64x128xf32>
    %30 = arith.addf %27, %29 : vector<64x128xf32>
    %c0_23 = arith.constant 0 : index
    %c0_24 = arith.constant 0 : index
    %31 = vector.load %arg10[%c0_23, %c0_24] : memref<64x128xf32, #tpu.memory_space<vmem>>, vector<64x128xf32>
    tpu.vector_store %arg10[%c0_23, %c0_24], %30 {strides = array<i32>} : memref<64x128xf32, #tpu.memory_space<vmem>>, vector<64x128xf32>,
    return
  }
  func.func @transform_0(%arg0: i32) -> (i32, i32) {
    %c0_i32 = arith.constant 0 : i32
    %c0_i32_0 = arith.constant 0 : i32
    return %arg0, %c0_i32 : i32, i32
  }
  func.func @transform_1(%arg0: i32) -> (i32, i32) {
    %c0_i32 = arith.constant 0 : i32
    %c0_i32_0 = arith.constant 0 : i32
    %c0_i32_1 = arith.constant 0 : i32
    return %c0_i32, %c0_i32_0 : i32, i32
  }
  func.func @transform_2(%arg0: i32) -> (i32, i32) {
    %c0_i32 = arith.constant 0 : i32
    %c0_i32_0 = arith.constant 0 : i32
    %c0_i32_1 = arith.constant 0 : i32
    return %c0_i32, %c0_i32_0 : i32, i32
  }
  func.func @transform_3(%arg0: i32) -> (i32, i32) {
    %c0_i32 = arith.constant 0 : i32
    %c0_i32_0 = arith.constant 0 : i32
    %c0_i32_1 = arith.constant 0 : i32
    return %c0_i32, %c0_i32_0 : i32, i32
  }
  func.func @transform_4(%arg0: i32) -> (i32, i32) {
    %c0_i32 = arith.constant 0 : i32
    %c0_i32_0 = arith.constant 0 : i32
    %c0_i32_1 = arith.constant 0 : i32
    return %c0_i32, %c0_i32_0 : i32, i32
  }
  func.func @transform_5(%arg0: i32) -> (i32, i32) {
    %c0_i32 = arith.constant 0 : i32
    %c0_i32_0 = arith.constant 0 : i32
    %c0_i32_1 = arith.constant 0 : i32
    return %c0_i32, %c0_i32_0 : i32, i32
  }
  func.func @transform_6(%arg0: i32) -> (i32, i32) {
    %c0_i32 = arith.constant 0 : i32
    %c0_i32_0 = arith.constant 0 : i32
    %c0_i32_1 = arith.constant 0 : i32
    return %c0_i32, %c0_i32_0 : i32, i32
  }
  func.func @transform_7(%arg0: i32) -> (i32, i32) {
    %c0_i32 = arith.constant 0 : i32
    %c0_i32_0 = arith.constant 0 : i32
    %c0_i32_1 = arith.constant 0 : i32
    return %c0_i32, %c0_i32_0 : i32, i32
  }
  func.func @transform_8(%arg0: i32) -> (i32, i32) {
    %c0_i32 = arith.constant 0 : i32
    %c0_i32_0 = arith.constant 0 : i32
    %c0_i32_1 = arith.constant 0 : i32
    return %c0_i32, %c0_i32_0 : i32, i32
  }
  func.func @transform_9(%arg0: i32) -> (i32, i32) {
    %c0_i32 = arith.constant 0 : i32
    %c0_i32_0 = arith.constant 0 : i32
    return %arg0, %c0_i32 : i32, i32
  }
}

</mosaic_0001>

<bundles_post_ra>
// kernel: tpu_custom_call.1
= control target key start
LH: loop header
LB: loop body
LE: loop exit
PB: predicated region body
PF: predicated region fallthrough
CT: control target
= control target key end

     0   :  { %14 = vsyncpa [#allocation3], 0  ;;  %s1010_s0 = inlined_call_operand.hbm [shape: f32[64,128], index: 0, kind: input, shape index: {}]   ;;  %s1011_s1 = inlined_call_operand.hbm [shape: bf16[128,128], index: 1, kind: input, shape index: {}]   ;;  %s1012_s2 = inlined_call_operand.vmem [shape: f32[1,128], index: 2, kind: input, shape index: {}]   ;;  %s1013_s3 = inlined_call_operand.hbm [shape: bf16[128,128], index: 3, kind: input, shape index: {}]   ;;  %s1014_s4 = inlined_call_operand.vmem [shape: f32[1,128], index: 4, kind: input, shape index: {}]   ;;  %s1015_s5 = inlined_call_operand.hbm [shape: bf16[128,128], index: 5, kind: input, shape index: {}]   ;;  %s1016_s6 = inlined_call_operand.vmem [shape: f32[1,128], index: 6, kind: input, shape index: {}]   ;;  %s1017_s7 = inlined_call_operand.hbm [shape: bf16[128,128], index: 7, kind: input, shape index: {}]   ;;  %s1018_s8 = inlined_call_operand.vmem [shape: f32[1,128], index: 8, kind: input, shape index: {}]   ;;  %s1019_s9 = inlined_call_operand.hbm [shape: f32[64,128], index: 9, kind: output, shape index: {}]  }
   0x1   :  { %15 = vsyncpa [#allocation6], 0 }
   0x2   :  { %16 = vsyncpa [#allocation9], 0  ;;  %s35_s11 = sshll.u32 %s1011_s1, 4  ;;  %s36_s11 = int_to_ptr.hbm [resolvable:$true] %s35_s11 }
   0x3   :  { %17 = vsyncpa [#allocation4], 0  ;;  %s902_s12 = smov [#allocation5]   ;;  %s65_s16 = sshll.u32 %s1015_s5, 4  ;;  %s66_s16 = int_to_ptr.hbm [resolvable:$true] %s65_s16 }
   0x4   :  { %s37_s13 = sshll.u32 %s902_s12, 4  ;;  %s903_s17 = smov 64   ;;  %s38_s13 = int_to_ptr.vmem [resolvable:$true] %s37_s13 }
   0x5   :  { %s904_s18 = smov 4   ;;  %s905_s19 = smov [#allocation8]  }
   0x6   :  { %43 = dma.hbm_to_vmem [thread:$0]  %s36_s11, 1024, %s38_s13, [#allocation6], %s903_s17, %s903_s17, %s904_s18  }
   0x7   :  { %s67_s20 = sshll.u32 %s905_s19, 4  ;;  %s22_s22 = sshll.u32 %s1010_s0, 4  ;;  %s68_s20 = int_to_ptr.vmem [resolvable:$true] %s67_s20  ;;  %s23_s22 = int_to_ptr.hbm [resolvable:$true] %s22_s22 }
   0x8   :  { %73 = dma.hbm_to_vmem [thread:$0]  %s66_s16, 1024, %s68_s20, [#allocation9], %s903_s17, %s903_s17, %s904_s18  }
   0x9   :  { %s906_s5 = smov [#allocation2]   ;;  %s50_s26 = sshll.u32 %s1013_s3, 4  ;;  %s51_s26 = int_to_ptr.hbm [resolvable:$true] %s50_s26 }
   0xa   :  { %s24_s23 = sshll.u32 %s906_s5, 4  ;;  %s907_s27 = smov 128   ;;  %s25_s23 = int_to_ptr.vmem [resolvable:$true] %s24_s23 }
   0xb   :  { %s908_s28 = smov 8   ;;  %s909_s0 = smov [#allocation7]  }
   0xc   :  { %30 = dma.hbm_to_vmem [thread:$0]  %s23_s22, 1024, %s25_s23, [#allocation3], %s907_s27, %s907_s27, %s908_s28  }
   0xd   :  { %s52_s29 = sshll.u32 %s909_s0, 4  ;;  %s80_s11 = sshll.u32 %s1017_s7, 4  ;;  %s53_s29 = int_to_ptr.vmem [resolvable:$true] %s52_s29  ;;  %s81_s11 = int_to_ptr.hbm [resolvable:$true] %s80_s11 }
   0xe   :  { %58 = dma.hbm_to_vmem [thread:$0]  %s51_s26, 1024, %s53_s29, [#allocation6], %s903_s17, %s903_s17, %s904_s18  }
   0xf   :  { %s910_s3 = smov [#allocation10]  }
  0x10   :  { %s82_s12 = sshll.u32 %s910_s3, 4  ;;  %s83_s12 = int_to_ptr.vmem [resolvable:$true] %s82_s12 }
  0x11   :  { %88 = dma.hbm_to_vmem [thread:$0]  %s81_s11, 1024, %s83_s12, [#allocation9], %s903_s17, %s903_s17, %s904_s18  }
  0x12   :  { %894 = dma.done.wait [#allocation3], 1024  }
  0x13   :  { %895 = vsyncadd [#allocation3], 4294966272 }
  0x14   :  { %896 = dma.done.wait [#allocation6], 2048  }
  0x15   :  { %897 = vsyncadd [#allocation6], 4294965248 }
  0x16   :  { %898 = dma.done.wait [#allocation9], 2048  }
  0x17   :  { %899 = vsyncadd [#allocation9], 4294965248  ;;  %v711_v0 = vld [vmem:[#allocation5 + $0x38] sm:$0xff]  ;;  %v710_v1 = vld [vmem:[#allocation5 + $0x30] sm:$0xff]  ;;  %s561_s20 = sshll.u32 %s1019_s9, 4  ;;  %s562_s20 = int_to_ptr.hbm [resolvable:$true] %s561_s20 }
  0x18   :  { %191 = vmatpush.bf16.msra.mxu0 %v711_v0  ;;  %v709_v2 = vld [vmem:[#allocation5 + $0x28] sm:$0xff]  ;;  %v708_v3 = vld [vmem:[#allocation5 + $0x20] sm:$0xff]  ;;  %v707_v4 = vld [vmem:[#allocation5 + $0x18] sm:$0xff] }
  0x19   :  { %v706_v5 = vld [vmem:[#allocation5 + $0x10] sm:$0xff]  ;;  %v705_v6 = vld [vmem:[#allocation5 + $0x8] sm:$0xff]  ;;  %v704_v7 = vld [vmem:[#allocation5] sm:$0xff] }
  0x1a   :  { %v111_v8 = vld [vmem:[#allocation2] sm:$0xff]  ;;  %v112_v9 = vld [vmem:[#allocation2 + $0x8] sm:$0xff]  ;;  %v113_v11 = vld [vmem:[#allocation2 + $0x10] sm:$0xff] }
  0x1b   :  { %v119_v10 = vpack.c.bf16 %v112_v9, %v111_v8  ;;  %v114_v12 = vld [vmem:[#allocation2 + $0x18] sm:$0xff]  ;;  %v718_v15 = vld [vmem:[#allocation7 + $0x30] sm:$0xff]  ;;  %v717_v16 = vld [vmem:[#allocation7 + $0x28] sm:$0xff] }
  0x1c   :  { %192 = vmatpush.bf16.msra.mxu0 %v710_v1  ;;  %v120_v13 = vpack.c.bf16 %v114_v12, %v113_v11  ;;  %v719_v14 = vld [vmem:[#allocation7 + $0x38] sm:$0xff]  ;;  %v115_v17 = vld [vmem:[#allocation2 + $0x20] sm:$0xff]  ;;  %v116_v18 = vld [vmem:[#allocation2 + $0x28] sm:$0xff] }
  0x1d   :  { %300 = vmatpush.bf16.msra.mxu1 %v719_v14  ;;  %v716_v19 = vld [vmem:[#allocation7 + $0x20] sm:$0xff]  ;;  %v121_v20 = vpack.c.bf16 %v116_v18, %v115_v17  ;;  %v117_v21 = vld [vmem:[#allocation2 + $0x30] sm:$0xff]  ;;  %v118_v22 = vld [vmem:[#allocation2 + $0x38] sm:$0xff] }
  0x1e   :  { %v122_v23 = vpack.c.bf16 %v118_v22, %v117_v21  ;;  %v715_v24 = vld [vmem:[#allocation7 + $0x18] sm:$0xff]  ;;  %v714_v25 = vld [vmem:[#allocation7 + $0x10] sm:$0xff]  ;;  %v713_v26 = vld [vmem:[#allocation7 + $0x8] sm:$0xff] }
  0x1f   :  { %v712_v27 = vld [vmem:[#allocation7] sm:$0xff]  ;;  %v727_v43 = vld [vmem:[#allocation8 + $0x38] sm:$0xff]  ;;  %v726_v45 = vld [vmem:[#allocation8 + $0x30] sm:$0xff] }
  0x20   :  { %193 = vmatpush.bf16.msra.mxu0 %v709_v2  ;;  %v746_v29 = vld [vmem:[%s1012_s2] ss:$0 sm:$0xff]  ;;  %409 = vmatpush.bf16.msra.mxu2 %v727_v43  ;;  %v725_v46 = vld [vmem:[#allocation8 + $0x28] sm:$0xff]  ;;  %v723_v61 = vld [vmem:[#allocation8 + $0x18] sm:$0xff] }
  0x21   :  { %301 = vmatpush.bf16.msra.mxu1 %v718_v15  ;;  %v724_v50 = vld [vmem:[#allocation8 + $0x20] sm:$0xff]  ;;  %v722_v62 = vld [vmem:[#allocation8 + $0x10] sm:$0xff]  ;;  %v721_v63 = vld [vmem:[#allocation8 + $0x8] sm:$0xff] }
  0x22   :  { %v720_v0 = vld [vmem:[#allocation8] sm:$0xff]  ;;  %v734_v18 = vld [vmem:[#allocation10 + $0x30] sm:$0xff] }
  0x23   :  { %v747_v2 = vld [vmem:[%s1014_s4] ss:$0 sm:$0xff] }
  0x24   :  { %194 = vmatpush.bf16.msra.mxu0 %v708_v3  ;;  %410 = vmatpush.bf16.msra.mxu2 %v726_v45 }
  0x25   :  { %302 = vmatpush.bf16.msra.mxu1 %v717_v16  ;;  %v735_v16 = vld [vmem:[#allocation10 + $0x38] sm:$0xff] }
  0x26   :  { %518 = vmatpush.bf16.msra.mxu3 %v735_v16 }
  0x28   :  { %195 = vmatpush.bf16.msra.mxu0 %v707_v4  ;;  %411 = vmatpush.bf16.msra.mxu2 %v725_v46 }
  0x29   :  { %303 = vmatpush.bf16.msra.mxu1 %v716_v19  ;;  %v733_v19 = vld [vmem:[#allocation10 + $0x28] sm:$0xff] }
  0x2a   :  { %519 = vmatpush.bf16.msra.mxu3 %v734_v18 }
  0x2c   :  { %196 = vmatpush.bf16.msra.mxu0 %v706_v5  ;;  %412 = vmatpush.bf16.msra.mxu2 %v724_v50 }
  0x2d   :  { %304 = vmatpush.bf16.msra.mxu1 %v715_v24 }
  0x2e   :  { %520 = vmatpush.bf16.msra.mxu3 %v733_v19 }
  0x30   :  { %197 = vmatpush.bf16.msra.mxu0 %v705_v6  ;;  %413 = vmatpush.bf16.msra.mxu2 %v723_v61 }
  0x31   :  { %305 = vmatpush.bf16.msra.mxu1 %v714_v25 }
  0x34   :  { %198 = vmatpush.bf16.msra.mxu0 %v704_v7  ;;  %414 = vmatpush.bf16.msra.mxu2 %v722_v62 }
  0x35   :  { %306 = vmatpush.bf16.msra.mxu1 %v713_v26 }
  0x37   :  { %199 = vmatmul.bf16.vlgmr.msra.gmra.mxu0 %v119_v10 }
  0x38   :  { %415 = vmatpush.bf16.msra.mxu2 %v721_v63 }
  0x39   :  { %307 = vmatpush.bf16.msra.mxu1 %v712_v27 }
  0x3c   :  { %416 = vmatpush.bf16.msra.mxu2 %v720_v0 }
  0x47   :  { %204 = vmatmul.bf16.gmra.mxu0 %v120_v13 }
  0x57   :  { %209 = vmatmul.bf16.gmra.mxu0 %v121_v20 }
  0x67   :  { %214 = vmatmul.bf16.gmra.mxu0 %v122_v23  ;;  %v732_v23 = vld [vmem:[#allocation10 + $0x20] sm:$0xff] }
  0x68   :  { %521 = vmatpush.bf16.msra.mxu3 %v732_v23 }
  0xb4   :  { %v200_v28 = vpop.f32.mrf.mxu0 }
  0xb5   :  { %v201_v30 = vadd.f32 %v746_v29, %v200_v28 }
  0xb7   :  { %v220_v33 = vmax.f32 %v201_v30, 0.0 }
  0xbc   :  { %v202_v31 = vpop.f32.mrf.mxu0 }
  0xbd   :  { %v203_v32 = vadd.f32 %v746_v29, %v202_v31 }
  0xbf   :  { %v221_v34 = vmax.f32 %v203_v32, 0.0 }
  0xc1   :  { %v228_v35 = vpack.c.bf16 %v221_v34, %v220_v33  ;;  %v731_v34 = vld [vmem:[#allocation10 + $0x18] sm:$0xff] }
  0xc2   :  { %522 = vmatpush.bf16.msra.mxu3 %v731_v34 }
  0xc3   :  { %308 = vmatmul.bf16.vlgmr.msra.gmra.mxu1 %v228_v35  ;;  %v730_v35 = vld [vmem:[#allocation10 + $0x10] sm:$0xff] }
  0xc4   :  { %v205_v36 = vpop.f32.mrf.mxu0 }
  0xc5   :  { %v206_v37 = vadd.f32 %v746_v29, %v205_v36  ;;  %v729_v36 = vld [vmem:[#allocation10 + $0x8] sm:$0xff] }
  0xc6   :  { %523 = vmatpush.bf16.msra.mxu3 %v730_v35 }
  0xc7   :  { %v222_v40 = vmax.f32 %v206_v37, 0.0  ;;  %v728_v37 = vld [vmem:[#allocation10] sm:$0xff] }
  0xca   :  { %524 = vmatpush.bf16.msra.mxu3 %v729_v36 }
  0xcc   :  { %v207_v38 = vpop.f32.mrf.mxu0 }
  0xcd   :  { %v208_v39 = vadd.f32 %v746_v29, %v207_v38 }
  0xce   :  { %525 = vmatpush.bf16.msra.mxu3 %v728_v37 }
  0xcf   :  { %v223_v41 = vmax.f32 %v208_v39, 0.0  ;;  %v748_v39 = vld [vmem:[%s1016_s6] ss:$0 sm:$0xff] }
  0xd1   :  { %v229_v42 = vpack.c.bf16 %v223_v41, %v222_v40 }
  0xd3   :  { %313 = vmatmul.bf16.gmra.mxu1 %v229_v42 }
  0xd4   :  { %v210_v44 = vpop.f32.mrf.mxu0 }
  0xd5   :  { %v211_v47 = vadd.f32 %v746_v29, %v210_v44 }
  0xd7   :  { %v224_v51 = vmax.f32 %v211_v47, 0.0 }
  0xdc   :  { %v212_v48 = vpop.f32.mrf.mxu0 }
  0xdd   :  { %v213_v49 = vadd.f32 %v746_v29, %v212_v48 }
  0xdf   :  { %v225_v52 = vmax.f32 %v213_v49, 0.0 }
  0xe1   :  { %v230_v53 = vpack.c.bf16 %v225_v52, %v224_v51 }
  0xe3   :  { %318 = vmatmul.bf16.gmra.mxu1 %v230_v53 }
  0xe4   :  { %v215_v54 = vpop.f32.mrf.mxu0 }
  0xe5   :  { %v216_v55 = vadd.f32 %v746_v29, %v215_v54 }
  0xe7   :  { %v226_v58 = vmax.f32 %v216_v55, 0.0 }
  0xec   :  { %v217_v56 = vpop.f32.mrf.mxu0 }
  0xed   :  { %v218_v57 = vadd.f32 %v746_v29, %v217_v56 }
  0xef   :  { %v227_v59 = vmax.f32 %v218_v57, 0.0 }
  0xf1   :  { %v231_v60 = vpack.c.bf16 %v227_v59, %v226_v58 }
  0xf3   :  { %323 = vmatmul.bf16.gmra.mxu1 %v231_v60 }
 0x140   :  { %v309_v1 = vpop.f32.mrf.mxu1 }
 0x141   :  { %v310_v3 = vadd.f32 %v747_v2, %v309_v1 }
 0x143   :  { %v329_v6 = vmax.f32 %v310_v3, 0.0  ;;  %v749_v3 = vld [vmem:[%s1018_s8] ss:$0 sm:$0xff]  ;;  %s911_s8 = smov [#allocation11]  }
 0x144   :  { %s559_s17 = sshll.u32 %s911_s8, 4  ;;  %s560_s17 = int_to_ptr.vmem [resolvable:$true] %s559_s17 }
 0x148   :  { %v311_v4 = vpop.f32.mrf.mxu1 }
 0x149   :  { %v312_v5 = vadd.f32 %v747_v2, %v311_v4 }
 0x14b   :  { %v330_v7 = vmax.f32 %v312_v5, 0.0 }
 0x14d   :  { %v337_v8 = vpack.c.bf16 %v330_v7, %v329_v6 }
 0x14f   :  { %417 = vmatmul.bf16.vlgmr.msra.gmra.mxu2 %v337_v8 }
 0x150   :  { %v314_v9 = vpop.f32.mrf.mxu1 }
 0x151   :  { %v315_v10 = vadd.f32 %v747_v2, %v314_v9 }
 0x153   :  { %v331_v13 = vmax.f32 %v315_v10, 0.0 }
 0x158   :  { %v316_v11 = vpop.f32.mrf.mxu1 }
 0x159   :  { %v317_v12 = vadd.f32 %v747_v2, %v316_v11 }
 0x15b   :  { %v332_v14 = vmax.f32 %v317_v12, 0.0 }
 0x15d   :  { %v338_v15 = vpack.c.bf16 %v332_v14, %v331_v13 }
 0x15f   :  { %422 = vmatmul.bf16.gmra.mxu2 %v338_v15 }
 0x160   :  { %v319_v17 = vpop.f32.mrf.mxu1 }
 0x161   :  { %v320_v20 = vadd.f32 %v747_v2, %v319_v17 }
 0x163   :  { %v333_v24 = vmax.f32 %v320_v20, 0.0 }
 0x168   :  { %v321_v21 = vpop.f32.mrf.mxu1 }
 0x169   :  { %v322_v22 = vadd.f32 %v747_v2, %v321_v21 }
 0x16b   :  { %v334_v25 = vmax.f32 %v322_v22, 0.0 }
 0x16d   :  { %v339_v26 = vpack.c.bf16 %v334_v25, %v333_v24 }
 0x16f   :  { %427 = vmatmul.bf16.gmra.mxu2 %v339_v26 }
 0x170   :  { %v324_v27 = vpop.f32.mrf.mxu1 }
 0x171   :  { %v325_v28 = vadd.f32 %v747_v2, %v324_v27 }
 0x173   :  { %v335_v31 = vmax.f32 %v325_v28, 0.0 }
 0x178   :  { %v326_v29 = vpop.f32.mrf.mxu1 }
 0x179   :  { %v327_v30 = vadd.f32 %v747_v2, %v326_v29 }
 0x17b   :  { %v336_v32 = vmax.f32 %v327_v30, 0.0 }
 0x17d   :  { %v340_v33 = vpack.c.bf16 %v336_v32, %v335_v31 }
 0x17f   :  { %432 = vmatmul.bf16.gmra.mxu2 %v340_v33 }
 0x1d2   :  { %v418_v38 = vpop.f32.mrf.mxu2 }
 0x1d3   :  { %v419_v40 = vadd.f32 %v748_v39, %v418_v38 }
 0x1d5   :  { %v438_v43 = vmax.f32 %v419_v40, 0.0 }
 0x1da   :  { %v420_v41 = vpop.f32.mrf.mxu2 }
 0x1db   :  { %v421_v42 = vadd.f32 %v748_v39, %v420_v41 }
 0x1dd   :  { %v439_v44 = vmax.f32 %v421_v42, 0.0 }
 0x1df   :  { %v446_v45 = vpack.c.bf16 %v439_v44, %v438_v43 }
 0x1e1   :  { %526 = vmatmul.bf16.vlgmr.msra.gmra.mxu3 %v446_v45 }
 0x1e2   :  { %v423_v46 = vpop.f32.mrf.mxu2 }
 0x1e3   :  { %v424_v47 = vadd.f32 %v748_v39, %v423_v46 }
 0x1e5   :  { %v440_v50 = vmax.f32 %v424_v47, 0.0 }
 0x1ea   :  { %v425_v48 = vpop.f32.mrf.mxu2 }
 0x1eb   :  { %v426_v49 = vadd.f32 %v748_v39, %v425_v48 }
 0x1ed   :  { %v441_v51 = vmax.f32 %v426_v49, 0.0 }
 0x1ef   :  { %v447_v52 = vpack.c.bf16 %v441_v51, %v440_v50 }
 0x1f1   :  { %531 = vmatmul.bf16.gmra.mxu3 %v447_v52 }
 0x1f2   :  { %v428_v53 = vpop.f32.mrf.mxu2 }
 0x1f3   :  { %v429_v54 = vadd.f32 %v748_v39, %v428_v53 }
 0x1f5   :  { %v442_v57 = vmax.f32 %v429_v54, 0.0 }
 0x1fa   :  { %v430_v55 = vpop.f32.mrf.mxu2 }
 0x1fb   :  { %v431_v56 = vadd.f32 %v748_v39, %v430_v55 }
 0x1fd   :  { %v443_v58 = vmax.f32 %v431_v56, 0.0 }
 0x1ff   :  { %v448_v59 = vpack.c.bf16 %v443_v58, %v442_v57 }
 0x201   :  { %536 = vmatmul.bf16.gmra.mxu3 %v448_v59 }
 0x202   :  { %v433_v60 = vpop.f32.mrf.mxu2 }
 0x203   :  { %v434_v61 = vadd.f32 %v748_v39, %v433_v60 }
 0x205   :  { %v444_v0 = vmax.f32 %v434_v61, 0.0 }
 0x20a   :  { %v435_v62 = vpop.f32.mrf.mxu2 }
 0x20b   :  { %v436_v63 = vadd.f32 %v748_v39, %v435_v62 }
 0x20d   :  { %v445_v1 = vmax.f32 %v436_v63, 0.0 }
 0x20f   :  { %v449_v2 = vpack.c.bf16 %v445_v1, %v444_v0 }
 0x211   :  { %541 = vmatmul.bf16.gmra.mxu3 %v449_v2 }
 0x264   :  { %v527_v4 = vpop.f32.mrf.mxu3 }
 0x265   :  { %v528_v5 = vadd.f32 %v749_v3, %v527_v4 }
 0x267   :  { %547 = vst [vmem:[#allocation11] sm:$0xff] %v528_v5 }
 0x26c   :  { %v529_v6 = vpop.f32.mrf.mxu3 }
 0x26d   :  { %v530_v7 = vadd.f32 %v749_v3, %v529_v6 }
 0x26f   :  { %548 = vst [vmem:[#allocation11 + $0x8] sm:$0xff] %v530_v7 }
 0x274   :  { %v532_v8 = vpop.f32.mrf.mxu3 }
 0x275   :  { %v533_v9 = vadd.f32 %v749_v3, %v532_v8 }
 0x277   :  { %549 = vst [vmem:[#allocation11 + $0x10] sm:$0xff] %v533_v9 }
 0x27c   :  { %v534_v10 = vpop.f32.mrf.mxu3 }
 0x27d   :  { %v535_v11 = vadd.f32 %v749_v3, %v534_v10 }
 0x27f   :  { %550 = vst [vmem:[#allocation11 + $0x18] sm:$0xff] %v535_v11 }
 0x284   :  { %v537_v12 = vpop.f32.mrf.mxu3 }
 0x285   :  { %v538_v13 = vadd.f32 %v749_v3, %v537_v12 }
 0x287   :  { %551 = vst [vmem:[#allocation11 + $0x20] sm:$0xff] %v538_v13 }
 0x28c   :  { %v539_v14 = vpop.f32.mrf.mxu3 }
 0x28d   :  { %v540_v15 = vadd.f32 %v749_v3, %v539_v14 }
 0x28f   :  { %552 = vst [vmem:[#allocation11 + $0x28] sm:$0xff] %v540_v15 }
 0x294   :  { %v542_v16 = vpop.f32.mrf.mxu3 }
 0x295   :  { %v543_v17 = vadd.f32 %v749_v3, %v542_v16 }
 0x297   :  { %553 = vst [vmem:[#allocation11 + $0x30] sm:$0xff] %v543_v17 }
 0x29c   :  { %v544_v18 = vpop.f32.mrf.mxu3 }
 0x29d   :  { %v545_v19 = vadd.f32 %v749_v3, %v544_v18 }
 0x29f   :  { %554 = vst [vmem:[#allocation11 + $0x38] sm:$0xff] %v545_v19 }
 0x2a0   :  { %567 = dma.vmem_to_hbm [thread:$0]  %s560_s17, 1024, %s562_s20, [#allocation4], %s907_s27, %s907_s27, %s908_s28  }
 0x2a1   :  { %900 = dma.done.wait [#allocation4], 1024  }
 0x2a2   :  { %901 = vsyncadd [#allocation4], 4294966272 }
 0x2a3   :  { %572 = vsyncpa [#allocation3], 1 }
 0x2a4   :  { %573 = vsyncpa [#allocation6], 1 }
 0x2a5   :  { %574 = vsyncpa [#allocation9], 1 }
 0x2a6   :  { %575 = vsyncpa [#allocation4], 1 }

// kernel: tpu_custom_call.1
= control target key start
LH: loop header
LB: loop body
LE: loop exit
PB: predicated region body
PF: predicated region fallthrough
CT: control target
= control target key end

     0   :  { %14 = vsyncpa [#allocation3], 0  ;;  %s1010_s0 = inlined_call_operand.hbm [shape: f32[64,128], index: 0, kind: input, shape index: {}]   ;;  %s1011_s1 = inlined_call_operand.hbm [shape: bf16[128,128], index: 1, kind: input, shape index: {}]   ;;  %s1012_s2 = inlined_call_operand.vmem [shape: f32[1,128], index: 2, kind: input, shape index: {}]   ;;  %s1013_s3 = inlined_call_operand.hbm [shape: bf16[128,128], index: 3, kind: input, shape index: {}]   ;;  %s1014_s4 = inlined_call_operand.vmem [shape: f32[1,128], index: 4, kind: input, shape index: {}]   ;;  %s1015_s5 = inlined_call_operand.hbm [shape: bf16[128,128], index: 5, kind: input, shape index: {}]   ;;  %s1016_s6 = inlined_call_operand.vmem [shape: f32[1,128], index: 6, kind: input, shape index: {}]   ;;  %s1017_s7 = inlined_call_operand.hbm [shape: bf16[128,128], index: 7, kind: input, shape index: {}]   ;;  %s1018_s8 = inlined_call_operand.vmem [shape: f32[1,128], index: 8, kind: input, shape index: {}]   ;;  %s1019_s9 = inlined_call_operand.hbm [shape: f32[64,128], index: 9, kind: output, shape index: {}]  }
   0x1   :  { %15 = vsyncpa [#allocation6], 0 }
   0x2   :  { %16 = vsyncpa [#allocation9], 0  ;;  %s35_s11 = sshll.u32 %s1011_s1, 4  ;;  %s36_s11 = int_to_ptr.hbm [resolvable:$true] %s35_s11 }
   0x3   :  { %17 = vsyncpa [#allocation4], 0  ;;  %s902_s12 = smov [#allocation5]   ;;  %s65_s16 = sshll.u32 %s1015_s5, 4  ;;  %s66_s16 = int_to_ptr.hbm [resolvable:$true] %s65_s16 }
   0x4   :  { %s37_s13 = sshll.u32 %s902_s12, 4  ;;  %s903_s17 = smov 64   ;;  %s38_s13 = int_to_ptr.vmem [resolvable:$true] %s37_s13 }
   0x5   :  { %s904_s18 = smov 4   ;;  %s905_s19 = smov [#allocation8]  }
   0x6   :  { %43 = dma.hbm_to_vmem [thread:$0]  %s36_s11, 1024, %s38_s13, [#allocation6], %s903_s17, %s903_s17, %s904_s18  }
   0x7   :  { %s67_s20 = sshll.u32 %s905_s19, 4  ;;  %s22_s22 = sshll.u32 %s1010_s0, 4  ;;  %s68_s20 = int_to_ptr.vmem [resolvable:$true] %s67_s20  ;;  %s23_s22 = int_to_ptr.hbm [resolvable:$true] %s22_s22 }
   0x8   :  { %73 = dma.hbm_to_vmem [thread:$0]  %s66_s16, 1024, %s68_s20, [#allocation9], %s903_s17, %s903_s17, %s904_s18  }
   0x9   :  { %s906_s5 = smov [#allocation2]   ;;  %s50_s26 = sshll.u32 %s1013_s3, 4  ;;  %s51_s26 = int_to_ptr.hbm [resolvable:$true] %s50_s26 }
   0xa   :  { %s24_s23 = sshll.u32 %s906_s5, 4  ;;  %s907_s27 = smov 128   ;;  %s25_s23 = int_to_ptr.vmem [resolvable:$true] %s24_s23 }
   0xb   :  { %s908_s28 = smov 8   ;;  %s909_s0 = smov [#allocation7]  }
   0xc   :  { %30 = dma.hbm_to_vmem [thread:$0]  %s23_s22, 1024, %s25_s23, [#allocation3], %s907_s27, %s907_s27, %s908_s28  }
   0xd   :  { %s52_s29 = sshll.u32 %s909_s0, 4  ;;  %s80_s11 = sshll.u32 %s1017_s7, 4  ;;  %s53_s29 = int_to_ptr.vmem [resolvable:$true] %s52_s29  ;;  %s81_s11 = int_to_ptr.hbm [resolvable:$true] %s80_s11 }
   0xe   :  { %58 = dma.hbm_to_vmem [thread:$0]  %s51_s26, 1024, %s53_s29, [#allocation6], %s903_s17, %s903_s17, %s904_s18  }
   0xf   :  { %s910_s3 = smov [#allocation10]  }
  0x10   :  { %s82_s12 = sshll.u32 %s910_s3, 4  ;;  %s83_s12 = int_to_ptr.vmem [resolvable:$true] %s82_s12 }
  0x11   :  { %88 = dma.hbm_to_vmem [thread:$0]  %s81_s11, 1024, %s83_s12, [#allocation9], %s903_s17, %s903_s17, %s904_s18  }
  0x12   :  { %894 = dma.done.wait [#allocation3], 1024  }
  0x13   :  { %895 = vsyncadd [#allocation3], 4294966272 }
  0x14   :  { %896 = dma.done.wait [#allocation6], 2048  }
  0x15   :  { %897 = vsyncadd [#allocation6], 4294965248 }
  0x16   :  { %898 = dma.done.wait [#allocation9], 2048  }
  0x17   :  { %899 = vsyncadd [#allocation9], 4294965248  ;;  %v711_v0 = vld [vmem:[#allocation5 + $0x38] sm:$0xff]  ;;  %v710_v1 = vld [vmem:[#allocation5 + $0x30] sm:$0xff]  ;;  %s561_s20 = sshll.u32 %s1019_s9, 4  ;;  %s562_s20 = int_to_ptr.hbm [resolvable:$true] %s561_s20 }
  0x18   :  { %191 = vmatpush.bf16.msra.mxu0 %v711_v0  ;;  %v709_v2 = vld [vmem:[#allocation5 + $0x28] sm:$0xff]  ;;  %v708_v3 = vld [vmem:[#allocation5 + $0x20] sm:$0xff]  ;;  %v707_v4 = vld [vmem:[#allocation5 + $0x18] sm:$0xff] }
  0x19   :  { %v706_v5 = vld [vmem:[#allocation5 + $0x10] sm:$0xff]  ;;  %v705_v6 = vld [vmem:[#allocation5 + $0x8] sm:$0xff]  ;;  %v704_v7 = vld [vmem:[#allocation5] sm:$0xff] }
  0x1a   :  { %v111_v8 = vld [vmem:[#allocation2] sm:$0xff]  ;;  %v112_v9 = vld [vmem:[#allocation2 + $0x8] sm:$0xff]  ;;  %v113_v11 = vld [vmem:[#allocation2 + $0x10] sm:$0xff] }
  0x1b   :  { %v119_v10 = vpack.c.bf16 %v112_v9, %v111_v8  ;;  %v114_v12 = vld [vmem:[#allocation2 + $0x18] sm:$0xff]  ;;  %v718_v15 = vld [vmem:[#allocation7 + $0x30] sm:$0xff]  ;;  %v717_v16 = vld [vmem:[#allocation7 + $0x28] sm:$0xff] }
  0x1c   :  { %192 = vmatpush.bf16.msra.mxu0 %v710_v1  ;;  %v120_v13 = vpack.c.bf16 %v114_v12, %v113_v11  ;;  %v719_v14 = vld [vmem:[#allocation7 + $0x38] sm:$0xff]  ;;  %v115_v17 = vld [vmem:[#allocation2 + $0x20] sm:$0xff]  ;;  %v116_v18 = vld [vmem:[#allocation2 + $0x28] sm:$0xff] }
  0x1d   :  { %300 = vmatpush.bf16.msra.mxu1 %v719_v14  ;;  %v716_v19 = vld [vmem:[#allocation7 + $0x20] sm:$0xff]  ;;  %v121_v20 = vpack.c.bf16 %v116_v18, %v115_v17  ;;  %v117_v21 = vld [vmem:[#allocation2 + $0x30] sm:$0xff]  ;;  %v118_v22 = vld [vmem:[#allocation2 + $0x38] sm:$0xff] }
  0x1e   :  { %v122_v23 = vpack.c.bf16 %v118_v22, %v117_v21  ;;  %v715_v24 = vld [vmem:[#allocation7 + $0x18] sm:$0xff]  ;;  %v714_v25 = vld [vmem:[#allocation7 + $0x10] sm:$0xff]  ;;  %v713_v26 = vld [vmem:[#allocation7 + $0x8] sm:$0xff] }
  0x1f   :  { %v712_v27 = vld [vmem:[#allocation7] sm:$0xff]  ;;  %v727_v43 = vld [vmem:[#allocation8 + $0x38] sm:$0xff]  ;;  %v726_v45 = vld [vmem:[#allocation8 + $0x30] sm:$0xff] }
  0x20   :  { %193 = vmatpush.bf16.msra.mxu0 %v709_v2  ;;  %v746_v29 = vld [vmem:[%s1012_s2] ss:$0 sm:$0xff]  ;;  %409 = vmatpush.bf16.msra.mxu2 %v727_v43  ;;  %v725_v46 = vld [vmem:[#allocation8 + $0x28] sm:$0xff]  ;;  %v723_v61 = vld [vmem:[#allocation8 + $0x18] sm:$0xff] }
  0x21   :  { %301 = vmatpush.bf16.msra.mxu1 %v718_v15  ;;  %v724_v50 = vld [vmem:[#allocation8 + $0x20] sm:$0xff]  ;;  %v722_v62 = vld [vmem:[#allocation8 + $0x10] sm:$0xff]  ;;  %v721_v63 = vld [vmem:[#allocation8 + $0x8] sm:$0xff] }
  0x22   :  { %v720_v0 = vld [vmem:[#allocation8] sm:$0xff]  ;;  %v734_v18 = vld [vmem:[#allocation10 + $0x30] sm:$0xff] }
  0x23   :  { %v747_v2 = vld [vmem:[%s1014_s4] ss:$0 sm:$0xff] }
  0x24   :  { %194 = vmatpush.bf16.msra.mxu0 %v708_v3  ;;  %410 = vmatpush.bf16.msra.mxu2 %v726_v45 }
  0x25   :  { %302 = vmatpush.bf16.msra.mxu1 %v717_v16  ;;  %v735_v16 = vld [vmem:[#allocation10 + $0x38] sm:$0xff] }
  0x26   :  { %518 = vmatpush.bf16.msra.mxu3 %v735_v16 }
  0x28   :  { %195 = vmatpush.bf16.msra.mxu0 %v707_v4  ;;  %411 = vmatpush.bf16.msra.mxu2 %v725_v46 }
  0x29   :  { %303 = vmatpush.bf16.msra.mxu1 %v716_v19  ;;  %v733_v19 = vld [vmem:[#allocation10 + $0x28] sm:$0xff] }
  0x2a   :  { %519 = vmatpush.bf16.msra.mxu3 %v734_v18 }
  0x2c   :  { %196 = vmatpush.bf16.msra.mxu0 %v706_v5  ;;  %412 = vmatpush.bf16.msra.mxu2 %v724_v50 }
  0x2d   :  { %304 = vmatpush.bf16.msra.mxu1 %v715_v24 }
  0x2e   :  { %520 = vmatpush.bf16.msra.mxu3 %v733_v19 }
  0x30   :  { %197 = vmatpush.bf16.msra.mxu0 %v705_v6  ;;  %413 = vmatpush.bf16.msra.mxu2 %v723_v61 }
  0x31   :  { %305 = vmatpush.bf16.msra.mxu1 %v714_v25 }
  0x34   :  { %198 = vmatpush.bf16.msra.mxu0 %v704_v7  ;;  %414 = vmatpush.bf16.msra.mxu2 %v722_v62 }
  0x35   :  { %306 = vmatpush.bf16.msra.mxu1 %v713_v26 }
  0x37   :  { %199 = vmatmul.bf16.vlgmr.msra.gmra.mxu0 %v119_v10 }
  0x38   :  { %415 = vmatpush.bf16.msra.mxu2 %v721_v63 }
  0x39   :  { %307 = vmatpush.bf16.msra.mxu1 %v712_v27 }
  0x3c   :  { %416 = vmatpush.bf16.msra.mxu2 %v720_v0 }
  0x47   :  { %204 = vmatmul.bf16.gmra.mxu0 %v120_v13 }
  0x57   :  { %209 = vmatmul.bf16.gmra.mxu0 %v121_v20 }
  0x67   :  { %214 = vmatmul.bf16.gmra.mxu0 %v122_v23  ;;  %v732_v23 = vld [vmem:[#allocation10 + $0x20] sm:$0xff] }
  0x68   :  { %521 = vmatpush.bf16.msra.mxu3 %v732_v23 }
  0xb4   :  { %v200_v28 = vpop.f32.mrf.mxu0 }
  0xb5   :  { %v201_v30 = vadd.f32 %v746_v29, %v200_v28 }
  0xb7   :  { %v220_v33 = vmax.f32 %v201_v30, 0.0 }
  0xbc   :  { %v202_v31 = vpop.f32.mrf.mxu0 }
  0xbd   :  { %v203_v32 = vadd.f32 %v746_v29, %v202_v31 }
  0xbf   :  { %v221_v34 = vmax.f32 %v203_v32, 0.0 }
  0xc1   :  { %v228_v35 = vpack.c.bf16 %v221_v34, %v220_v33  ;;  %v731_v34 = vld [vmem:[#allocation10 + $0x18] sm:$0xff] }
  0xc2   :  { %522 = vmatpush.bf16.msra.mxu3 %v731_v34 }
  0xc3   :  { %308 = vmatmul.bf16.vlgmr.msra.gmra.mxu1 %v228_v35  ;;  %v730_v35 = vld [vmem:[#allocation10 + $0x10] sm:$0xff] }
  0xc4   :  { %v205_v36 = vpop.f32.mrf.mxu0 }
  0xc5   :  { %v206_v37 = vadd.f32 %v746_v29, %v205_v36  ;;  %v729_v36 = vld [vmem:[#allocation10 + $0x8] sm:$0xff] }
  0xc6   :  { %523 = vmatpush.bf16.msra.mxu3 %v730_v35 }
  0xc7   :  { %v222_v40 = vmax.f32 %v206_v37, 0.0  ;;  %v728_v37 = vld [vmem:[#allocation10] sm:$0xff] }
  0xca   :  { %524 = vmatpush.bf16.msra.mxu3 %v729_v36 }
  0xcc   :  { %v207_v38 = vpop.f32.mrf.mxu0 }
  0xcd   :  { %v208_v39 = vadd.f32 %v746_v29, %v207_v38 }
  0xce   :  { %525 = vmatpush.bf16.msra.mxu3 %v728_v37 }
  0xcf   :  { %v223_v41 = vmax.f32 %v208_v39, 0.0  ;;  %v748_v39 = vld [vmem:[%s1016_s6] ss:$0 sm:$0xff] }
  0xd1   :  { %v229_v42 = vpack.c.bf16 %v223_v41, %v222_v40 }
  0xd3   :  { %313 = vmatmul.bf16.gmra.mxu1 %v229_v42 }
  0xd4   :  { %v210_v44 = vpop.f32.mrf.mxu0 }
  0xd5   :  { %v211_v47 = vadd.f32 %v746_v29, %v210_v44 }
  0xd7   :  { %v224_v51 = vmax.f32 %v211_v47, 0.0 }
  0xdc   :  { %v212_v48 = vpop.f32.mrf.mxu0 }
  0xdd   :  { %v213_v49 = vadd.f32 %v746_v29, %v212_v48 }
  0xdf   :  { %v225_v52 = vmax.f32 %v213_v49, 0.0 }
  0xe1   :  { %v230_v53 = vpack.c.bf16 %v225_v52, %v224_v51 }
  0xe3   :  { %318 = vmatmul.bf16.gmra.mxu1 %v230_v53 }
  0xe4   :  { %v215_v54 = vpop.f32.mrf.mxu0 }
  0xe5   :  { %v216_v55 = vadd.f32 %v746_v29, %v215_v54 }
  0xe7   :  { %v226_v58 = vmax.f32 %v216_v55, 0.0 }
  0xec   :  { %v217_v56 = vpop.f32.mrf.mxu0 }
  0xed   :  { %v218_v57 = vadd.f32 %v746_v29, %v217_v56 }
  0xef   :  { %v227_v59 = vmax.f32 %v218_v57, 0.0 }
  0xf1   :  { %v231_v60 = vpack.c.bf16 %v227_v59, %v226_v58 }
  0xf3   :  { %323 = vmatmul.bf16.gmra.mxu1 %v231_v60 }
 0x140   :  { %v309_v1 = vpop.f32.mrf.mxu1 }
 0x141   :  { %v310_v3 = vadd.f32 %v747_v2, %v309_v1 }
 0x143   :  { %v329_v6 = vmax.f32 %v310_v3, 0.0  ;;  %v749_v3 = vld [vmem:[%s1018_s8] ss:$0 sm:$0xff]  ;;  %s911_s8 = smov [#allocation11]  }
 0x144   :  { %s559_s17 = sshll.u32 %s911_s8, 4  ;;  %s560_s17 = int_to_ptr.vmem [resolvable:$true] %s559_s17 }
 0x148   :  { %v311_v4 = vpop.f32.mrf.mxu1 }
 0x149   :  { %v312_v5 = vadd.f32 %v747_v2, %v311_v4 }
 0x14b   :  { %v330_v7 = vmax.f32 %v312_v5, 0.0 }
 0x14d   :  { %v337_v8 = vpack.c.bf16 %v330_v7, %v329_v6 }
 0x14f   :  { %417 = vmatmul.bf16.vlgmr.msra.gmra.mxu2 %v337_v8 }
 0x150   :  { %v314_v9 = vpop.f32.mrf.mxu1 }
 0x151   :  { %v315_v10 = vadd.f32 %v747_v2, %v314_v9 }
 0x153   :  { %v331_v13 = vmax.f32 %v315_v10, 0.0 }
 0x158   :  { %v316_v11 = vpop.f32.mrf.mxu1 }
 0x159   :  { %v317_v12 = vadd.f32 %v747_v2, %v316_v11 }
 0x15b   :  { %v332_v14 = vmax.f32 %v317_v12, 0.0 }
 0x15d   :  { %v338_v15 = vpack.c.bf16 %v332_v14, %v331_v13 }
 0x15f   :  { %422 = vmatmul.bf16.gmra.mxu2 %v338_v15 }
 0x160   :  { %v319_v17 = vpop.f32.mrf.mxu1 }
 0x161   :  { %v320_v20 = vadd.f32 %v747_v2, %v319_v17 }
 0x163   :  { %v333_v24 = vmax.f32 %v320_v20, 0.0 }
 0x168   :  { %v321_v21 = vpop.f32.mrf.mxu1 }
 0x169   :  { %v322_v22 = vadd.f32 %v747_v2, %v321_v21 }
 0x16b   :  { %v334_v25 = vmax.f32 %v322_v22, 0.0 }
 0x16d   :  { %v339_v26 = vpack.c.bf16 %v334_v25, %v333_v24 }
 0x16f   :  { %427 = vmatmul.bf16.gmra.mxu2 %v339_v26 }
 0x170   :  { %v324_v27 = vpop.f32.mrf.mxu1 }
 0x171   :  { %v325_v28 = vadd.f32 %v747_v2, %v324_v27 }
 0x173   :  { %v335_v31 = vmax.f32 %v325_v28, 0.0 }
 0x178   :  { %v326_v29 = vpop.f32.mrf.mxu1 }
 0x179   :  { %v327_v30 = vadd.f32 %v747_v2, %v326_v29 }
 0x17b   :  { %v336_v32 = vmax.f32 %v327_v30, 0.0 }
 0x17d   :  { %v340_v33 = vpack.c.bf16 %v336_v32, %v335_v31 }
 0x17f   :  { %432 = vmatmul.bf16.gmra.mxu2 %v340_v33 }
 0x1d2   :  { %v418_v38 = vpop.f32.mrf.mxu2 }
 0x1d3   :  { %v419_v40 = vadd.f32 %v748_v39, %v418_v38 }
 0x1d5   :  { %v438_v43 = vmax.f32 %v419_v40, 0.0 }
 0x1da   :  { %v420_v41 = vpop.f32.mrf.mxu2 }
 0x1db   :  { %v421_v42 = vadd.f32 %v748_v39, %v420_v41 }
 0x1dd   :  { %v439_v44 = vmax.f32 %v421_v42, 0.0 }
 0x1df   :  { %v446_v45 = vpack.c.bf16 %v439_v44, %v438_v43 }
 0x1e1   :  { %526 = vmatmul.bf16.vlgmr.msra.gmra.mxu3 %v446_v45 }
 0x1e2   :  { %v423_v46 = vpop.f32.mrf.mxu2 }
 0x1e3   :  { %v424_v47 = vadd.f32 %v748_v39, %v423_v46 }
 0x1e5   :  { %v440_v50 = vmax.f32 %v424_v47, 0.0 }
 0x1ea   :  { %v425_v48 = vpop.f32.mrf.mxu2 }
 0x1eb   :  { %v426_v49 = vadd.f32 %v748_v39, %v425_v48 }
 0x1ed   :  { %v441_v51 = vmax.f32 %v426_v49, 0.0 }
 0x1ef   :  { %v447_v52 = vpack.c.bf16 %v441_v51, %v440_v50 }
 0x1f1   :  { %531 = vmatmul.bf16.gmra.mxu3 %v447_v52 }
 0x1f2   :  { %v428_v53 = vpop.f32.mrf.mxu2 }
 0x1f3   :  { %v429_v54 = vadd.f32 %v748_v39, %v428_v53 }
 0x1f5   :  { %v442_v57 = vmax.f32 %v429_v54, 0.0 }
 0x1fa   :  { %v430_v55 = vpop.f32.mrf.mxu2 }
 0x1fb   :  { %v431_v56 = vadd.f32 %v748_v39, %v430_v55 }
 0x1fd   :  { %v443_v58 = vmax.f32 %v431_v56, 0.0 }
 0x1ff   :  { %v448_v59 = vpack.c.bf16 %v443_v58, %v442_v57 }
 0x201   :  { %536 = vmatmul.bf16.gmra.mxu3 %v448_v59 }
 0x202   :  { %v433_v60 = vpop.f32.mrf.mxu2 }
 0x203   :  { %v434_v61 = vadd.f32 %v748_v39, %v433_v60 }
 0x205   :  { %v444_v0 = vmax.f32 %v434_v61, 0.0 }
 0x20a   :  { %v435_v62 = vpop.f32.mrf.mxu2 }
 0x20b   :  { %v436_v63 = vadd.f32 %v748_v39, %v435_v62 }
 0x20d   :  { %v445_v1 = vmax.f32 %v436_v63, 0.0 }
 0x20f   :  { %v449_v2 = vpack.c.bf16 %v445_v1, %v444_v0 }
 0x211   :  { %541 = vmatmul.bf16.gmra.mxu3 %v449_v2 }
 0x264   :  { %v527_v4 = vpop.f32.mrf.mxu3 }
 0x265   :  { %v528_v5 = vadd.f32 %v749_v3, %v527_v4 }
 0x267   :  { %547 = vst [vmem:[#allocation11] sm:$0xff] %v528_v5 }
 0x26c   :  { %v529_v6 = vpop.f32.mrf.mxu3 }
 0x26d   :  { %v530_v7 = vadd.f32 %v749_v3, %v529_v6 }
 0x26f   :  { %548 = vst [vmem:[#allocation11 + $0x8] sm:$0xff] %v530_v7 }
 0x274   :  { %v532_v8 = vpop.f32.mrf.mxu3 }
 0x275   :  { %v533_v9 = vadd.f32 %v749_v3, %v532_v8 }
 0x277   :  { %549 = vst [vmem:[#allocation11 + $0x10] sm:$0xff] %v533_v9 }
 0x27c   :  { %v534_v10 = vpop.f32.mrf.mxu3 }
 0x27d   :  { %v535_v11 = vadd.f32 %v749_v3, %v534_v10 }
 0x27f   :  { %550 = vst [vmem:[#allocation11 + $0x18] sm:$0xff] %v535_v11 }
 0x284   :  { %v537_v12 = vpop.f32.mrf.mxu3 }
 0x285   :  { %v538_v13 = vadd.f32 %v749_v3, %v537_v12 }
 0x287   :  { %551 = vst [vmem:[#allocation11 + $0x20] sm:$0xff] %v538_v13 }
 0x28c   :  { %v539_v14 = vpop.f32.mrf.mxu3 }
 0x28d   :  { %v540_v15 = vadd.f32 %v749_v3, %v539_v14 }
 0x28f   :  { %552 = vst [vmem:[#allocation11 + $0x28] sm:$0xff] %v540_v15 }
 0x294   :  { %v542_v16 = vpop.f32.mrf.mxu3 }
 0x295   :  { %v543_v17 = vadd.f32 %v749_v3, %v542_v16 }
 0x297   :  { %553 = vst [vmem:[#allocation11 + $0x30] sm:$0xff] %v543_v17 }
 0x29c   :  { %v544_v18 = vpop.f32.mrf.mxu3 }
 0x29d   :  { %v545_v19 = vadd.f32 %v749_v3, %v544_v18 }
 0x29f   :  { %554 = vst [vmem:[#allocation11 + $0x38] sm:$0xff] %v545_v19 }
 0x2a0   :  { %567 = dma.vmem_to_hbm [thread:$0]  %s560_s17, 1024, %s562_s20, [#allocation4], %s907_s27, %s907_s27, %s908_s28  }
 0x2a1   :  { %900 = dma.done.wait [#allocation4], 1024  }
 0x2a2   :  { %901 = vsyncadd [#allocation4], 4294966272 }
 0x2a3   :  { %572 = vsyncpa [#allocation3], 1 }
 0x2a4   :  { %573 = vsyncpa [#allocation6], 1 }
 0x2a5   :  { %574 = vsyncpa [#allocation9], 1 }
 0x2a6   :  { %575 = vsyncpa [#allocation4], 1 }

</bundles_post_ra>
